<compile_context>
chip_gen: v5e
topology: v5e:2x2
jax: 0.10.0
libtpu: 0.0.40
codegen_flags: <defaults>
</compile_context>

<pallas_src>
import functools

import jax
import jax.numpy as jnp
from jax.experimental import pallas as pl
from jax.experimental.pallas import tpu as pltpu

_LANES = 128
_ACC_ROWS = 32              # accumulator height: 4 independent f32 vregs
_MAX_TILE_ROWS = 8192       # 8192 x 128 x f32 = 4 MiB per input block
_NUM_CORES = 2              # v7x TensorCores; harmless 2-step loop on 1-TC chips
_VMEM_LIMIT_BYTES = 48 * 1024 * 1024


def _round_up(x, m):
    return ((x + m - 1) // m) * m


def _loss_kernel(pred_ref, tgt_ref, out_ref, *, mode, tile_rows, rows_total,
                 blocks_per_core):
    c = pl.program_id(0)            # core / outer-parallel index
    i = pl.program_id(1)            # streaming block index within this core
    b = c * blocks_per_core + i     # global row-block index

    @pl.when(i == 0)
    def _init():
        out_ref[...] = jnp.zeros_like(out_ref)

    diff = pred_ref[...].astype(jnp.float32) - tgt_ref[...].astype(jnp.float32)
    if mode == "l2":      # PyTorch 'l2' branch -> F.l1_loss  (mean |diff|)
        val = jnp.abs(diff)
    elif mode == "l1":    # PyTorch 'l1' branch -> F.mse_loss (mean diff^2)
        val = diff * diff
    else:
        raise ValueError(f"unsupported loss mode: {mode}")

    def _accumulate(v):
        # Fold (tile_rows, 128) -> (32, 128) with pure VPU adds into 4
        # independent accumulator vregs; the cross-lane reduction happens once,
        # in the wrapper.
        s = v.reshape(-1, _ACC_ROWS, _LANES).sum(axis=0)
        out_ref[...] += s[None]

    # Rows of this block that actually exist. May be > tile_rows (full block),
    # in (0, tile_rows) (ragged last block), or <= 0 (padding block a core gets
    # when the total block count is odd -> contribute nothing).
    valid_rows = rows_total - b * tile_rows

    @pl.when(valid_rows >= tile_rows)
    def _full_tile():
        _accumulate(val)

    @pl.when(jnp.logical_and(valid_rows > 0, valid_rows < tile_rows))
    def _ragged_tile():
        row_ids = jax.lax.broadcasted_iota(jnp.int32, val.shape, 0)
        _accumulate(jnp.where(row_ids < valid_rows, val, 0.0))


def seq2seq_loss(pred, target, shift_out=None, shift_in=None, loss="l2",
                 max_tile_rows=_MAX_TILE_ROWS):
    """Pallas equivalent of Seq2SeqLoss.forward.

    shift_out / shift_in are accepted but unused (they are unused in the
    PyTorch forward as well).
    """
    if loss not in ("l2", "l1"):
        raise ValueError(f"unsupported loss mode: {loss}")

    pred_flat = jnp.ravel(pred)
    tgt_flat = jnp.ravel(target)
    n = pred_flat.shape[0]

    rem = n % _LANES
    n_main = n - rem

    # Ragged-lane tail (< 128 elements): O(1) plain JAX. No padded copy of the
    # full arrays.
    if rem != 0:
        tail_d = (pred_flat[n_main:].astype(jnp.float32)
                  - tgt_flat[n_main:].astype(jnp.float32))
        tail_sum = (jnp.sum(jnp.abs(tail_d)) if loss == "l2"
                    else jnp.sum(tail_d * tail_d))
    else:
        tail_sum = jnp.float32(0.0)

    if n_main == 0:
        return tail_sum / n

    rows = n_main // _LANES
    pred2d = (pred_flat if rem == 0 else pred_flat[:n_main]).reshape(rows, _LANES)
    tgt2d = (tgt_flat if rem == 0 else tgt_flat[:n_main]).reshape(rows, _LANES)

    # Streaming tile: as big as the budget allows (amortize per-step overhead),
    # always a multiple of 32 rows (covers f32/bf16/int8 sublane packing and the
    # accumulator fold).
    max_tile_rows = _round_up(max(int(max_tile_rows), _ACC_ROWS), _ACC_ROWS)
    tile_rows = min(max_tile_rows, _round_up(rows, _ACC_ROWS))
    blocks_total = pl.cdiv(rows, tile_rows)
    blocks_per_core = pl.cdiv(blocks_total, _NUM_CORES)
    grid = (_NUM_CORES, blocks_per_core)

    def in_index_map(c, i):
        # Clamp so the (at most one) padding block past the end re-reads the
        # last real block; its contribution is masked out in the kernel.
        return (jnp.minimum(c * blocks_per_core + i, blocks_total - 1), 0)

    kernel = functools.partial(
        _loss_kernel, mode=loss, tile_rows=tile_rows, rows_total=rows,
        blocks_per_core=blocks_per_core,
    )

    in_bytes = rows * _LANES * (pred2d.dtype.itemsize + tgt2d.dtype.itemsize)
    cost = pl.CostEstimate(
        flops=3 * rows * _LANES,
        transcendentals=0,
        bytes_accessed=in_bytes + _NUM_CORES * _ACC_ROWS * _LANES * 4,
    )

    partial = pl.pallas_call(
        kernel,
        out_shape=jax.ShapeDtypeStruct((_NUM_CORES, _ACC_ROWS, _LANES),
                                       jnp.float32),
        grid_spec=pltpu.PrefetchScalarGridSpec(
            num_scalar_prefetch=0,
            grid=grid,
            in_specs=[
                pl.BlockSpec((tile_rows, _LANES), in_index_map),
                pl.BlockSpec((tile_rows, _LANES), in_index_map),
            ],
            out_specs=pl.BlockSpec((1, _ACC_ROWS, _LANES),
                                   lambda c, i: (c, 0, 0)),
        ),
        compiler_params=pltpu.CompilerParams(
            dimension_semantics=("parallel", "arbitrary"),
            vmem_limit_bytes=_VMEM_LIMIT_BYTES,
        ),
        cost_estimate=cost,
    )(pred2d, tgt2d)

    # TODO(synk): for n >= ~1e9, pairwise-fold per-block partials (or widen the
    # accumulator further) to bound f32 summation error.
    return (jnp.sum(partial) + tail_sum) / n


def _ref_loss(pred, target, loss):
    d = pred.astype(jnp.float32).ravel() - target.astype(jnp.float32).ravel()
    return jnp.mean(jnp.abs(d)) if loss == "l2" else jnp.mean(d * d)


if __name__ == "__main__":
    key = jax.random.PRNGKey(0)
    ks = jax.random.split(key, 8)

    # Primary shape "(batch_size, features)" — large enough that the kernel runs.
    batch, features = 2, 128
    pred = jax.random.normal(ks[0], (batch, features), dtype=jnp.float32)
    target = jax.random.normal(ks[1], (batch, features), dtype=jnp.float32)
    shift_out = jnp.zeros((batch, features), jnp.float32)  # unused, as in PyTorch
    shift_in = jnp.zeros((batch, features), jnp.float32)   # unused, as in PyTorch

    # 'l2' branch -> L1 loss (mean abs error), as in the PyTorch module.
    out_l2 = jax.block_until_ready(seq2seq_loss(pred, target, shift_out, shift_in, "l2"))
    ref_l2 = _ref_loss(pred, target, "l2")
    assert jnp.allclose(out_l2, ref_l2, rtol=1e-5, atol=1e-6), (out_l2, ref_l2)

    # 'l1' branch -> MSE loss, as in the PyTorch module.
    out_l1 = jax.block_until_ready(seq2seq_loss(pred, target, shift_out, shift_in, "l1"))
    ref_l1 = _ref_loss(pred, target, "l1")
    assert jnp.allclose(out_l1, ref_l1, rtol=1e-5, atol=1e-6), (out_l1, ref_l1)

    # Tiny input (< 128 elements): handled entirely by the plain-JAX tail path.
    sp = jax.random.normal(ks[2], (2, 32), dtype=jnp.float32)
    st = jax.random.normal(ks[3], (2, 32), dtype=jnp.float32)
    for m in ("l2", "l1"):
        o = jax.block_until_ready(seq2seq_loss(sp, st, None, None, m))
        r = _ref_loss(sp, st, m)
        assert jnp.allclose(o, r, rtol=1e-5, atol=1e-6), (m, o, r)

    # Multi-tile ragged-row case: 70 rows, forced 32-row tiles -> 3 blocks split
    # across the two core ranges, last block ragged, plus one fully-masked
    # padding block (exercises every kernel path).
    bp = jax.random.normal(ks[4], (70, 128), dtype=jnp.float32)
    bt = jax.random.normal(ks[5], (70, 128), dtype=jnp.float32)
    out_big = jax.block_until_ready(
        seq2seq_loss(bp, bt, None, None, "l2", max_tile_rows=32))
    ref_big = _ref_loss(bp, bt, "l2")
    assert jnp.allclose(out_big, ref_big, rtol=1e-5, atol=1e-6), (out_big, ref_big)

    # Ragged-lane case: n not divisible by 128 -> kernel on the aligned prefix,
    # plain-JAX tail for the remaining <128 elements.
    rp = jax.random.normal(ks[6], (3, 100), dtype=jnp.float32)
    rt = jax.random.normal(ks[7], (3, 100), dtype=jnp.float32)
    out_rag = jax.block_until_ready(seq2seq_loss(rp, rt, None, None, "l1"))
    ref_rag = _ref_loss(rp, rt, "l1")
    assert jnp.allclose(out_rag, ref_rag, rtol=1e-5, atol=1e-6), (out_rag, ref_rag)

    print("KERNEL_OK")
</pallas_src>

<mosaic_0001>
module attributes {stable_mosaic.version = 11 : i64} {
  func.func @_loss_kernel(%arg0: i32, %arg1: i32, %arg2: memref<32x128xf32, #tpu.memory_space<vmem>>, %arg3: memref<32x128xf32, #tpu.memory_space<vmem>>, %arg4: memref<1x32x128xf32, #tpu.memory_space<vmem>>) attributes {dimension_semantics = [#tpu.dimension_semantics<parallel>, #tpu.dimension_semantics<arbitrary>], iteration_bounds = array<i64: 2, 1>, scalar_prefetch = 0 : i64, scratch_operands = 0 : i64, tpu.core_type = #tpu.core_type<tc>, window_params = [{transform_indices = @transform_0, window_bounds = array<i64: 32, 128>}, {transform_indices = @transform_1, window_bounds = array<i64: 32, 128>}, {transform_indices = @transform_2, window_bounds = array<i64: 1, 32, 128>}]} {
    %c1_i32 = arith.constant 1 : i32
    %0 = arith.muli %arg0, %c1_i32 : i32
    %1 = arith.addi %0, %arg1 : i32
    %c0_i32 = arith.constant 0 : i32
    %2 = arith.cmpi eq, %arg1, %c0_i32 : i32
    %3 = arith.extui %2 : i1 to i32
    %c0_i32_0 = arith.constant 0 : i32
    %4 = arith.cmpi ne, %3, %c0_i32_0 : i32
    scf.if %4 {
      %cst = arith.constant 0.000000e+00 : f32
      %19 = vector.broadcast %cst : f32 to vector<1x32x128xf32>
      %c0_9 = arith.constant 0 : index
      %c0_10 = arith.constant 0 : index
      %c0_11 = arith.constant 0 : index
      %20 = vector.load %arg4[%c0_9, %c0_10, %c0_11] : memref<1x32x128xf32, #tpu.memory_space<vmem>>, vector<1x32x128xf32>
      tpu.vector_store %arg4[%c0_9, %c0_10, %c0_11], %19 {strides = array<i32>} : memref<1x32x128xf32, #tpu.memory_space<vmem>>, vector<1x32x128xf32>,
    } else {
    }
    %c0 = arith.constant 0 : index
    %c0_1 = arith.constant 0 : index
    %5 = vector.load %arg2[%c0, %c0_1] : memref<32x128xf32, #tpu.memory_space<vmem>>, vector<32x128xf32>
    %c0_2 = arith.constant 0 : index
    %c0_3 = arith.constant 0 : index
    %6 = vector.load %arg3[%c0_2, %c0_3] : memref<32x128xf32, #tpu.memory_space<vmem>>, vector<32x128xf32>
    %7 = arith.subf %5, %6 : vector<32x128xf32>
    %8 = math.absf %7 : vector<32x128xf32>
    %c32_i32 = arith.constant 32 : i32
    %9 = arith.muli %1, %c32_i32 : i32
    %c2_i32 = arith.constant 2 : i32
    %10 = arith.subi %c2_i32, %9 : i32
    %c32_i32_4 = arith.constant 32 : i32
    %11 = arith.cmpi sge, %10, %c32_i32_4 : i32
    %12 = arith.extui %11 : i1 to i32
    %c0_i32_5 = arith.constant 0 : i32
    %13 = arith.cmpi ne, %12, %c0_i32_5 : i32
    scf.if %13 {
      %19 = vector.shape_cast %8 : vector<32x128xf32> to vector<1x32x128xf32>
      %cst = arith.constant dense<0.000000e+00> : vector<32x128xf32>
      %20 = vector.multi_reduction <add>, %19, %cst [0] : vector<1x32x128xf32> to vector<32x128xf32>
      %c0_9 = arith.constant 0 : index
      %c0_10 = arith.constant 0 : index
      %c0_11 = arith.constant 0 : index
      %21 = vector.load %arg4[%c0_9, %c0_10, %c0_11] : memref<1x32x128xf32, #tpu.memory_space<vmem>>, vector<1x32x128xf32>
      %22 = vector.shape_cast %20 : vector<32x128xf32> to vector<1x32x128xf32>
      %23 = arith.addf %21, %22 : vector<1x32x128xf32>
      %c0_12 = arith.constant 0 : index
      %c0_13 = arith.constant 0 : index
      %c0_14 = arith.constant 0 : index
      %24 = vector.load %arg4[%c0_12, %c0_13, %c0_14] : memref<1x32x128xf32, #tpu.memory_space<vmem>>, vector<1x32x128xf32>
      tpu.vector_store %arg4[%c0_12, %c0_13, %c0_14], %23 {strides = array<i32>} : memref<1x32x128xf32, #tpu.memory_space<vmem>>, vector<1x32x128xf32>,
    } else {
    }
    %c0_i32_6 = arith.constant 0 : i32
    %14 = arith.cmpi sgt, %10, %c0_i32_6 : i32
    %c32_i32_7 = arith.constant 32 : i32
    %15 = arith.cmpi slt, %10, %c32_i32_7 : i32
    %16 = arith.andi %14, %15 : i1
    %17 = arith.extui %16 : i1 to i32
    %c0_i32_8 = arith.constant 0 : i32
    %18 = arith.cmpi ne, %17, %c0_i32_8 : i32
    scf.if %18 {
      %19 = tpu.iota {dimensions = array<i32: 0>} : vector<32x128xi32>
      %20 = vector.broadcast %10 : i32 to vector<32x128xi32>
      %21 = arith.cmpi slt, %19, %20 : vector<32x128xi32>
      %cst = arith.constant 0.000000e+00 : f32
      %22 = vector.broadcast %cst : f32 to vector<32x128xf32>
      %23 = arith.select %21, %8, %22 : vector<32x128xi1>, vector<32x128xf32>
      %24 = vector.shape_cast %23 : vector<32x128xf32> to vector<1x32x128xf32>
      %cst_9 = arith.constant dense<0.000000e+00> : vector<32x128xf32>
      %25 = vector.multi_reduction <add>, %24, %cst_9 [0] : vector<1x32x128xf32> to vector<32x128xf32>
      %c0_10 = arith.constant 0 : index
      %c0_11 = arith.constant 0 : index
      %c0_12 = arith.constant 0 : index
      %26 = vector.load %arg4[%c0_10, %c0_11, %c0_12] : memref<1x32x128xf32, #tpu.memory_space<vmem>>, vector<1x32x128xf32>
      %27 = vector.shape_cast %25 : vector<32x128xf32> to vector<1x32x128xf32>
      %28 = arith.addf %26, %27 : vector<1x32x128xf32>
      %c0_13 = arith.constant 0 : index
      %c0_14 = arith.constant 0 : index
      %c0_15 = arith.constant 0 : index
      %29 = vector.load %arg4[%c0_13, %c0_14, %c0_15] : memref<1x32x128xf32, #tpu.memory_space<vmem>>, vector<1x32x128xf32>
      tpu.vector_store %arg4[%c0_13, %c0_14, %c0_15], %28 {strides = array<i32>} : memref<1x32x128xf32, #tpu.memory_space<vmem>>, vector<1x32x128xf32>,
    } else {
    }
    return
  }
  func.func @transform_0(%arg0: i32, %arg1: i32) -> (i32, i32) {
    %c1_i32 = arith.constant 1 : i32
    %0 = arith.muli %arg0, %c1_i32 : i32
    %1 = arith.addi %0, %arg1 : i32
    %c0_i32 = arith.constant 0 : i32
    %2 = arith.minsi %1, %c0_i32 : i32
    %c0_i32_0 = arith.constant 0 : i32
    %c0_i32_1 = arith.constant 0 : i32
    return %2, %c0_i32_0 : i32, i32
  }
  func.func @transform_1(%arg0: i32, %arg1: i32) -> (i32, i32) {
    %c1_i32 = arith.constant 1 : i32
    %0 = arith.muli %arg0, %c1_i32 : i32
    %1 = arith.addi %0, %arg1 : i32
    %c0_i32 = arith.constant 0 : i32
    %2 = arith.minsi %1, %c0_i32 : i32
    %c0_i32_0 = arith.constant 0 : i32
    %c0_i32_1 = arith.constant 0 : i32
    return %2, %c0_i32_0 : i32, i32
  }
  func.func @transform_2(%arg0: i32, %arg1: i32) -> (i32, i32, i32) {
    %c0_i32 = arith.constant 0 : i32
    %c0_i32_0 = arith.constant 0 : i32
    %c0_i32_1 = arith.constant 0 : i32
    return %arg0, %c0_i32, %c0_i32_0 : i32, i32, i32
  }
}

</mosaic_0001>

<bundles_post_ra>
// kernel: tpu_custom_call.1
= control target key start
LH: loop header
LB: loop body
LE: loop exit
PB: predicated region body
PF: predicated region fallthrough
CT: control target
= control target key end

     0   :  { %7 = vsyncpa [#allocation3], 0  ;;  %s981_s0 = inlined_call_operand.hbm [shape: f32[2,128], index: 0, kind: input, shape index: {}]   ;;  %s982_s1 = inlined_call_operand.hbm [shape: f32[2,128], index: 1, kind: input, shape index: {}]   ;;  %s983_s2 = inlined_call_operand.hbm [shape: f32[2,32,128], index: 2, kind: output, shape index: {}]  }
   0x1   :  { %9 = vsyncpa [#allocation3 + $0x1], 0 }
   0x2   :  { %10 = vsyncpa [#allocation6], 0 }
   0x3   :  { %12 = vsyncpa [#allocation6 + $0x1], 0 }
   0x4   :  { %13 = vsyncpa [#allocation4], 0 }
   0x5   :  { %15 = vsyncpa [#allocation4 + $0x1], 0  ;;  %s796_s9 = smov 0   ;;  %s798_s10 = smov 0  }
   0x6   :  { %s800_s11 = smov 0   ;;  %s802_s12 = smov 0  }
   0x7   :  { %s804_s13 = smov 0   ;;  %s806_s14 = smov 0  }
   0x8   :  { %s808_s15 = smov 0   ;;  %s810_s16 = smov 0  }
   0x9 LB: > { %s461_s17 = sadd.s32 4294967295, %s770_s16   ;;  %s462_s18 = sadd.s32 4294967294, %s770_s16   ;;  %s770_s16 = sphi %s810_s16, %s21_s16   ;;  %s766_s15 = sphi %s808_s15, %s993_s15   ;;  %s762_s14 = sphi %s806_s14, %s992_s14   ;;  %s758_s13 = sphi %s804_s13, %s971_s13   ;;  %s754_s12 = sphi %s802_s12, %s991_s12   ;;  %s750_s11 = sphi %s800_s11, %s990_s11   ;;  %s746_s10 = sphi %s798_s10, %s989_s10   ;;  %s742_s9 = sphi %s796_s9, %s988_s9  }
   0xa   : > { %s33_s19 = sadd.s32 1, %s766_s15  ;;  %p739_p1 = scmp.ne.s32.totalorder %s758_s13, 0 }
   0xb   : > { %p35_p0 = scmp.ge.s32.totalorder %s33_s19, 2  ;;  %p54_p2 = scmp.eq.s32.totalorder %s770_s16, 0 }
   0xc   : > { %p59_p3 = scmp.ne.s32.totalorder %s758_s13, %s754_s12  ;;  %p60_p5 = scmp.eq.s32.totalorder %s461_s17, 0 }
   0xd   : > { %s995_s19 = smov (%p35_p0, %s33_s19), 0  ;;  %p842_p4 = por %p739_p1, %p54_p2 }
   0xe   : > { %p846_p6 = por %p60_p5, %p59_p3  ;;  %s101_s22 = ssub.s32 %s766_s15, %s995_s19 }
   0xf   : > { %p102_p7 = scmp.eq.s32.totalorder %s101_s22, 0  ;;  %s104_s23 = sadd.s32 1, %s750_s11 }
  0x10   : > { %p114_p8 = scmp.ne.s32.totalorder %s750_s11, %s746_s10  ;;  %p115_p9 = scmp.eq.s32.totalorder %s461_s17, 1 }
  0x11   : > { %s854_s24 = scalar_select %p102_p7, %s750_s11, %s104_s23  }
  0x12   : > { %p120_p10 = scmp.ne.s32.totalorder %s746_s10, %s742_s9  ;;  %p121_p11 = scmp.eq.s32.totalorder %s462_s18, 1 }
  0x13   : > { %p860_p12 = por %p115_p9, %p114_p8  ;;  %p464_p0 = scmp.ge.s32.totalorder %s770_s16, 2 }
  0x14   : > { %p864_p13 = por %p121_p11, %p120_p10 }
  0x15   : > { %137 = sbr.rel (%p464_p0) target bundleno = 70 (0x46), region = 16 }
  0x1a   : > { %140 = sbr.rel (!%p842_p4) target bundleno = 48 (0x30), region = 20 }
  0x1f   : > { %154 = vsyncadd [#allocation3], 480  ;;  %s772_s27 = smov [#allocation2]   ;;  %s159_s3 = sshll.u32 %s981_s0, 4  ;;  %s160_s3 = int_to_ptr.hbm [resolvable:$true] %s159_s3 }
  0x20   : > { %s161_s28 = sshll.u32 %s772_s27, 4  ;;  %s581_s4 = sshra.s32 %s160_s3, 4  ;;  %s162_s28 = int_to_ptr.vmem [resolvable:$true] %s161_s28  ;;  %s582_s4 = int_to_ptr.hbm [resolvable:$true] %s581_s4 }
  0x21   : > { %s588_s5 = scalar_lea.hbm %s582_s4, 2  ;;  %s592_s8 = scalar_lea.hbm %s981_s0, 2 }
  0x22   : > { %p589_p1 = scmp.ne.s32.totalorder %s582_s4, %s588_s5  ;;  %p594_p2 = scmp.lt.s32.totalorder %s592_s8, %s588_s5 }
  0x24   : > { %p596_p3 = pnand %p594_p2, %p589_p1 }
  0x26   : > { %599 = shalt.err (!%p596_p3)
}
  0x27   : > { %s600_s12 = sshra.s32 %s162_s28, 4  ;;  %s611_s18 = scalar_lea.vmem %s772_s27, 64  ;;  %s601_s12 = int_to_ptr.vmem [resolvable:$true] %s600_s12 }
  0x28   : > { %s607_s17 = scalar_lea.vmem %s601_s12, 2 }
  0x29   : > { %p608_p5 = scmp.ne.s32.totalorder %s601_s12, %s607_s17  ;;  %p613_p7 = scmp.lt.s32.totalorder %s611_s18, %s607_s17 }
  0x2b   : > { %p615_p8 = pnand %p613_p7, %p608_p5 }
  0x2d   : > { %618 = shalt.err (!%p615_p8)
}
  0x2e   : > { %s773_s22 = smov 32   ;;  %s774_s23 = smov 2  }
  0x2f   : > { %167 = dma.hbm_to_vmem [thread:$0]  %s160_s3, 32, %s162_s28, [#allocation3], %s773_s22, %s773_s22, %s774_s23  }
  0x30 PF: > { %170 = sbr.rel (!%p842_p4) target bundleno = 70 (0x46), region = 24 }
  0x35   : > { %184 = vsyncadd [#allocation6], 480  ;;  %s775_s29 = smov [#allocation5]   ;;  %s189_s6 = sshll.u32 %s982_s1, 4  ;;  %s190_s6 = int_to_ptr.hbm [resolvable:$true] %s189_s6 }
  0x36   : > { %s191_s30 = sshll.u32 %s775_s29, 4  ;;  %s620_s27 = sshra.s32 %s190_s6, 4  ;;  %s192_s30 = int_to_ptr.vmem [resolvable:$true] %s191_s30  ;;  %s621_s27 = int_to_ptr.hbm [resolvable:$true] %s620_s27 }
  0x37   : > { %s627_s7 = scalar_lea.hbm %s621_s27, 2  ;;  %s631_s28 = scalar_lea.hbm %s982_s1, 2 }
  0x38   : > { %p628_p9 = scmp.ne.s32.totalorder %s621_s27, %s627_s7  ;;  %p633_p10 = scmp.lt.s32.totalorder %s631_s28, %s627_s7 }
  0x3a   : > { %p635_p11 = pnand %p633_p10, %p628_p9 }
  0x3c   : > { %638 = shalt.err (!%p635_p11)
}
  0x3d   : > { %s639_s20 = sshra.s32 %s192_s30, 4  ;;  %s650_s17 = scalar_lea.vmem %s775_s29, 64  ;;  %s640_s20 = int_to_ptr.vmem [resolvable:$true] %s639_s20 }
  0x3e   : > { %s646_s3 = scalar_lea.vmem %s640_s20, 2 }
  0x3f   : > { %p647_p4 = scmp.ne.s32.totalorder %s640_s20, %s646_s3  ;;  %p652_p1 = scmp.lt.s32.totalorder %s650_s17, %s646_s3 }
  0x41   : > { %p654_p2 = pnand %p652_p1, %p647_p4 }
  0x43   : > { %657 = shalt.err (!%p654_p2)
}
  0x44   : > { %s776_s18 = smov 32   ;;  %s777_s22 = smov 2  }
  0x45   : > { %197 = dma.hbm_to_vmem [thread:$0]  %s190_s6, 32, %s192_s30, [#allocation6], %s776_s18, %s776_s18, %s777_s22  }
  0x46 PF: > { %p479_p3 = scmp.ge.s32.totalorder %s770_s16, 1  ;;  %p199_p5 = scmp.lt.s32.totalorder %s770_s16, 3 }
  0x48   : > { %p200_p7 = pnand %p479_p3, %p199_p5 }
  0x49   : > { %s205_s23 = sand.u32 (!%p200_p7), 1, %s758_s13  }
  0x4a   : > { %203 = sbr.rel (%p200_p7) target bundleno = 136 (0x88), region = 28  ;;  %s480_s4 = sshll.u32 (!%p200_p7), %s205_s23, 5 }
  0x4b   : > { %s206_s5 = scalar_lea.sflag (!%p200_p7), [#allocation3], %s205_s23  ;;  %s209_s29 = scalar_lea.vmem (!%p200_p7), [#allocation2], %s480_s4 }
  0x4f   : > { %724 = dma.done.wait (%p846_p6), %s206_s5, 512  }
  0x50   : > { %726 = vsyncadd (%p846_p6), %s206_s5, 4294966784  ;;  %s216_s30 = scalar_lea.sflag [#allocation6], %s205_s23  ;;  %s219_s6 = scalar_lea.vmem [#allocation5], %s480_s4 }
  0x51   : > { %728 = dma.done.wait (%p846_p6), %s216_s30, 512  }
  0x52   : > { %730 = vsyncadd (%p846_p6), %s216_s30, 4294966784  ;;  %s243_s27 = sand.u32 1, %s746_s10   ;;  %s483_s7 = sshll.u32 %s762_s14, 5  ;;  %v778_v0 = vmov 0.0   ;;  %v267_v1 = vld [vmem:[%s209_s29] sm:$0xff]  ;;  %v268_v2 = vld [vmem:[%s209_s29 + $0x8] sm:$0xff] }
  0x53   : > { %s482_s8 = sshll.u32 %s243_s27, 5  ;;  %s904_s12 = ssub.s32 2, %s483_s7  ;;  %v269_v3 = vld [vmem:[%s209_s29 + $0x10] sm:$0xff]  ;;  %v270_v4 = vld [vmem:[%s209_s29 + $0x18] sm:$0xff]  ;;  %v271_v5 = vld [vmem:[%s219_s6] sm:$0xff] }
  0x54   : > { %s906_s28 = scalar_lea.vmem [#allocation7], %s482_s8  ;;  %v272_v6 = vld [vmem:[%s219_s6 + $0x8] sm:$0xff]  ;;  %v273_v7 = vld [vmem:[%s219_s6 + $0x10] sm:$0xff]  ;;  %v274_v8 = vld [vmem:[%s219_s6 + $0x18] sm:$0xff]  ;;  %v275_v9 = vsub.f32 %v267_v1, %v271_v5  ;;  %p484_p6 = scmp.lt.s32.totalorder %s904_s12, 32 }
  0x55   : > { %263 = vst [vmem:[%s906_s28] sm:$0xff] %v778_v0  ;;  %v276_v10 = vsub.f32 %v268_v2, %v272_v6  ;;  %v277_v11 = vsub.f32 %v269_v3, %v273_v7  ;;  %v278_v12 = vsub.f32 %v270_v4, %v274_v8 }
  0x56   : > { %264 = vst [vmem:[%s906_s28 + $0x8] sm:$0xff] %v778_v0  ;;  %v279_v13 = vand.u32 2147483647, %v275_v9  ;;  %288 = sbr.rel (%p484_p6) target bundleno = 99 (0x63), region = 44 }
  0x57   : > { %265 = vst [vmem:[%s906_s28 + $0x10] sm:$0xff] %v778_v0  ;;  %v280_v14 = vand.u32 2147483647, %v276_v10  ;;  %v281_v15 = vand.u32 2147483647, %v277_v11 }
  0x58   : > { %266 = vst [vmem:[%s906_s28 + $0x18] sm:$0xff] %v778_v0  ;;  %v282_v16 = vand.u32 2147483647, %v278_v12 }
  0x5c   : > { %v293_v17 = vld [vmem:[%s906_s28] sm:$0xff] }
  0x5d   : > { %v294_v18 = vld [vmem:[%s906_s28 + $0x8] sm:$0xff]  ;;  %v297_v20 = vadd.f32 %v293_v17, %v279_v13 }
  0x5e   : > { %v295_v19 = vld [vmem:[%s906_s28 + $0x10] sm:$0xff]  ;;  %v298_v21 = vadd.f32 %v294_v18, %v280_v14 }
  0x5f   : > { %v299_v22 = vadd.f32 %v295_v19, %v281_v15  ;;  %v296_v23 = vld [vmem:[%s906_s28 + $0x18] sm:$0xff]  ;;  %301 = vst [vmem:[%s906_s28] sm:$0xff] %v297_v20 }
  0x60   : > { %v300_v24 = vadd.f32 %v296_v23, %v282_v16  ;;  %302 = vst [vmem:[%s906_s28 + $0x8] sm:$0xff] %v298_v21 }
  0x61   : > { %303 = vst [vmem:[%s906_s28 + $0x10] sm:$0xff] %v299_v22 }
  0x62   : > { %304 = vst [vmem:[%s906_s28 + $0x18] sm:$0xff] %v300_v24 }
  0x63 PF: > { %p305_p8 = scmp.gt.s32.totalorder %s904_s12, 0 }
  0x65   : > { %p307_p9 = pnand %p484_p6, %p305_p8 }
  0x67   : > { %310 = sbr.rel (%p307_p9) target bundleno = 121 (0x79), region = 48 }
  0x6c   : > { %v311_v25 = vlaneseq  ;;  %v316_v26 = vstv %s904_s12  ;;  %v329_v28 = vld [vmem:[%s906_s28] sm:$0xff]  ;;  %v330_v33 = vld [vmem:[%s906_s28 + $0x8] sm:$0xff]  ;;  %v331_v34 = vld [vmem:[%s906_s28 + $0x10] sm:$0xff] }
  0x6d   : > { %v332_v35 = vld [vmem:[%s906_s28 + $0x18] sm:$0xff] }
  0x6e   : > { %v312_v27 = vshrl.u32 %v311_v25, 7 }
  0x70   : > { %vm317_vm0 = vcmp.lt.s32.totalorder %v312_v27, %v316_v26  ;;  %v313_v29 = vadd.s32 8, %v312_v27  ;;  %v314_v30 = vadd.s32 16, %v312_v27  ;;  %v315_v31 = vadd.s32 24, %v312_v27 }
  0x71   : > { %v321_v32 = vsel %vm317_vm0, %v279_v13, 0.0 }
  0x72   : > { %v333_v36 = vadd.f32 %v329_v28, %v321_v32  ;;  %vm318_vm1 = vcmp.lt.s32.totalorder %v313_v29, %v316_v26  ;;  %vm319_vm2 = vcmp.lt.s32.totalorder %v314_v30, %v316_v26  ;;  %vm320_vm3 = vcmp.lt.s32.totalorder %v315_v31, %v316_v26 }
  0x73   : > { %v322_v37 = vsel %vm318_vm1, %v280_v14, 0.0  ;;  %v323_v38 = vsel %vm319_vm2, %v281_v15, 0.0  ;;  %v324_v39 = vsel %vm320_vm3, %v282_v16, 0.0 }
  0x74   : > { %337 = vst [vmem:[%s906_s28] sm:$0xff] %v333_v36  ;;  %v334_v40 = vadd.f32 %v330_v33, %v322_v37  ;;  %v335_v41 = vadd.f32 %v331_v34, %v323_v38  ;;  %v336_v42 = vadd.f32 %v332_v35, %v324_v39 }
  0x76   : > { %338 = vst [vmem:[%s906_s28 + $0x8] sm:$0xff] %v334_v40 }
  0x77   : > { %339 = vst [vmem:[%s906_s28 + $0x10] sm:$0xff] %v335_v41 }
  0x78   : > { %340 = vst [vmem:[%s906_s28 + $0x18] sm:$0xff] %v336_v42 }
  0x79 PF: > { %s353_s3 = scalar_lea.hbm %s983_s2, %s483_s7  ;;  %s354_s17 = sshll.u32 %s906_s28, 4  ;;  %s355_s17 = int_to_ptr.vmem [resolvable:$true] %s354_s17 }
  0x7a   : > { %s356_s18 = sshll.u32 %s353_s3, 4  ;;  %s342_s22 = scalar_lea.sflag [#allocation4], %s243_s27  ;;  %s357_s18 = int_to_ptr.hbm [resolvable:$true] %s356_s18 }
  0x7b   : > { %s673_s23 = sshra.s32 %s357_s18, 4  ;;  %s679_s29 = scalar_lea.hbm %s983_s2, 64  ;;  %s674_s23 = int_to_ptr.hbm [resolvable:$true] %s673_s23 }
  0x7c   : > { %s675_s4 = scalar_lea.hbm %s674_s23, 32  ;;  %p680_p1 = scmp.lt.s32.totalorder %s674_s23, %s983_s2 }
  0x7d   : > { %p676_p10 = scmp.ne.s32.totalorder %s674_s23, %s675_s4  ;;  %p681_p2 = scmp.lt.s32.totalorder %s679_s29, %s675_s4 }
  0x7f   : > { %p677_p11 = pnand %p676_p10, %p860_p12  ;;  %p682_p3 = por %p681_p2, %p680_p1 }
  0x81   : > { %p678_p4 = pneg %p677_p11 }
  0x83   : > { %p683_p5 = pnand %p682_p3, %p678_p4 }
  0x85   : > { %686 = shalt.err (!%p683_p5)
}
  0x86   : > { %s779_s27 = smov 128   ;;  %s780_s7 = smov 8  }
  0x87   : > { %495 = dma.vmem_to_hbm [thread:$0]  (%p860_p12), %s355_s17, 512, %s357_s18, %s342_s22, %s779_s27, %s779_s27, %s780_s7  }
  0x88 PF: > { %s371_s8 = sand.u32 1, %s742_s9   ;;  %p498_p7 = pnand %p464_p0, %p864_p13 }
  0x89   : > { %s372_s12 = scalar_lea.sflag [#allocation4], %s371_s8 }
  0x8a   : > { %p499_p6 = pneg %p498_p7 }
  0x8c   : > { %732 = dma.done.wait (%p499_p6), %s372_s12, 512  }
  0x8d   : > { %734 = vsyncadd (%p499_p6), %s372_s12, 4294966784  ;;  %s21_s16 = sadd.s32 1, %s770_s16   ;;  %s988_s9 = smov %s746_s10 }
  0x8e   : > { %p18_p8 = scmp.ge.s32.totalorder %s21_s16, 4   ;;  %s989_s10 = smov %s750_s11 }
  0x8f   : > { %s990_s11 = smov %s854_s24  ;;  %s991_s12 = smov %s758_s13 }
  0x90   : > { %s971_s13 = smov 0   ;;  %s992_s14 = smov %s766_s15 }
  0x91   : > { %s993_s15 = smov %s995_s19  ;;  %20 = sbr.rel (!%p18_p8) target bundleno = 9 (0x9), region = 98 }
  0x96   :  { %378 = vsyncpa [#allocation3], 1 }
  0x97   :  { %380 = vsyncpa [#allocation3 + $0x1], 1 }
  0x98   :  { %381 = vsyncpa [#allocation6], 1 }
  0x99   :  { %383 = vsyncpa [#allocation6 + $0x1], 1 }
  0x9a   :  { %384 = vsyncpa [#allocation4], 1 }
  0x9b   :  { %386 = vsyncpa [#allocation4 + $0x1], 1 }

</bundles_post_ra>
